<compile_context>
chip_gen: v7x
topology: tpu7x:2x2x1
jax: 0.10.0
libtpu: 0.0.40
codegen_flags: <defaults>
</compile_context>

<pallas_src>
import jax
import jax.numpy as jnp
import numpy as np
from jax.experimental import pallas as pl
from jax.experimental.pallas import tpu as pltpu

_LANE = 128  # lane width the padded output / weight slab are aligned to


def _round_up(v, m):
    return ((v + m - 1) // m) * m


# ---------------------------------------------------------------------------
# Kernel
# ---------------------------------------------------------------------------
def _make_kernel(dims, offsets):
    """Fused 5-matmul MLP chain for one batch tile, fully resident in VMEM.

    dims    : tuple of (d_in, d_out) per layer (static Python ints)
    offsets : row offset of each layer's weight inside the packed weight slab
    """
    n_layers = len(dims)

    def kernel(x_ref, w_ref, b_ref, out_ref):
        # f32 -> bf16 cast happens in VMEM (no extra HBM pass in the wrapper).
        h = x_ref[...].astype(jnp.bfloat16)                          # (tm, D)
        for i, ((din, dout), off) in enumerate(zip(dims, offsets)):
            w = w_ref[off:off + din, :dout]                          # bf16 (din, dout)
            b = b_ref[i:i + 1, :dout]                                # f32  (1, dout)
            y = jnp.dot(h, w, preferred_element_type=jnp.float32) + b
            if i + 1 < n_layers:
                # ReLU after the bf16 down-cast: half the VALU work on v6e/v7x
                # (packed bf16); exact same result as relu-then-cast.
                h = jnp.maximum(y.astype(jnp.bfloat16), 0.0)
            else:
                h = y                                                # f32 (tm, E_pad)
        # torch.abs; padded output lanes stay exactly 0 (zero-padded u2/c2).
        out_ref[...] = jnp.abs(h).astype(out_ref.dtype)

    return kernel


# ---------------------------------------------------------------------------
# Parameter preparation (fold + lane-pad + pack into 2 slabs)
# ---------------------------------------------------------------------------
def prepare_params(params):
    """Fold w2@u0 (exact, f32), lane-pad edge_types, pack weights into one bf16
    slab and biases into one f32 slab (3 kernel operands total)."""
    f32 = jnp.float32

    # (h@w2 + b2)@u0 + c0 == h@(w2@u0) + (b2@u0 + c0)
    wf = params["w2"].astype(f32) @ params["u0"].astype(f32)               # (H2, H1)
    bf_ = params["b2"].astype(f32) @ params["u0"].astype(f32) + params["c0"].astype(f32)

    E = params["u2"].shape[1]
    e_pad = _round_up(E, _LANE)
    u2p = jnp.zeros((params["u2"].shape[0], e_pad), f32).at[:, :E].set(params["u2"])
    c2p = jnp.zeros((1, e_pad), f32).at[:, :E].set(params["c2"])

    layers = [
        (params["w0"], params["b0"]),   # init_MLP layer 0 (+ReLU)
        (params["w1"], params["b1"]),   # init_MLP layer 1 (+ReLU)
        (wf, bf_),                      # fused (init layer 2 ∘ dist layer 0) (+ReLU)
        (params["u1"], params["c1"]),   # MLP_distribution layer 1 (+ReLU)
        (u2p, c2p),                     # MLP_distribution layer 2 (lane-padded)
    ]
    dims = tuple((int(w.shape[0]), int(w.shape[1])) for w, _ in layers)
    lane_max = _round_up(max(d for _, d in dims), _LANE)

    offsets, r = [], 0
    for din, _ in dims:
        offsets.append(r)
        r += _round_up(din, 16)          # 16-row alignment (bf16 sublane tile)
    total_rows = _round_up(r, 16)

    w_slab = jnp.zeros((total_rows, lane_max), f32)
    b_slab = jnp.zeros((len(layers), lane_max), f32)
    for i, ((w, b), (din, dout), off) in enumerate(zip(layers, dims, offsets)):
        w_slab = w_slab.at[off:off + din, :dout].set(w.astype(f32))
        b_slab = b_slab.at[i, :dout].set(jnp.reshape(b, (-1,)).astype(f32))

    return {
        "w_slab": w_slab.astype(jnp.bfloat16),   # ~100 KB at demo shapes
        "b_slab": b_slab,                        # biases stay f32
        "dims": dims,
        "offsets": tuple(offsets),
        "e_pad": int(e_pad),
        "edge_types": int(E),
    }


# ---------------------------------------------------------------------------
# Wrapper
# ---------------------------------------------------------------------------
def _choose_block_m(batch, max_block_m=4096, single_step_max=1024):
    if batch <= single_step_max:
        # One grid step; round to 16 for bf16 sublane packing.
        return _round_up(max(batch, 16), 16)
    # >= 2 grid steps so dimension_semantics=("parallel",) can shard across
    # both TensorCores on v7x; cap the tile so double-buffered in/out +
    # intermediates stay well inside scoped VMEM on every chip generation.
    return min(max_block_m, _round_up((batch + 1) // 2, 16))


def mlp_dict_forward(x, prepped, *, max_block_m=4096):
    """x: (B, D) float32 (or bf16).  Returns (distribution, distribution)."""
    B, D = x.shape
    dims, offsets = prepped["dims"], prepped["offsets"]
    e_pad, E = prepped["e_pad"], prepped["edge_types"]
    assert D == dims[0][0], "input feature dim mismatch"

    block_m = _choose_block_m(B, max_block_m)
    num_blocks = pl.cdiv(B, block_m)
    rows_pad = num_blocks * block_m   # padded output rows -> all stores in-bounds

    out = pl.pallas_call(
        _make_kernel(dims, offsets),
        out_shape=jax.ShapeDtypeStruct((rows_pad, e_pad), jnp.bfloat16),
        grid_spec=pltpu.PrefetchScalarGridSpec(
            num_scalar_prefetch=0,
            grid=(num_blocks,),
            in_specs=[
                # x: tiled over batch; ragged tail handled as a partial block.
                pl.BlockSpec((block_m, D), lambda i: (i, 0)),
                # Packed params: constant index_map -> stay resident in VMEM.
                pl.BlockSpec(prepped["w_slab"].shape, lambda i: (0, 0)),
                pl.BlockSpec(prepped["b_slab"].shape, lambda i: (0, 0)),
            ],
            out_specs=pl.BlockSpec((block_m, e_pad), lambda i: (i, 0)),
        ),
        compiler_params=pltpu.CompilerParams(
            dimension_semantics=("parallel",),
            vmem_limit_bytes=32 * 1024 * 1024,
        ),
    )(x, prepped["w_slab"], prepped["b_slab"])

    distribution = out[:B, :E].astype(jnp.float32)
    return distribution, distribution   # forward returns (distribution, distribution)


# ---------------------------------------------------------------------------
# Synthetic parameters + pure-JAX reference
# ---------------------------------------------------------------------------
def init_params(key, input_dim, hidden_size, edge_types):
    """Deterministic synthetic parameters (shapes match the torch module), f32."""
    H1, H2 = hidden_size
    dims_init = [input_dim, H1, H2, input_dim]       # init_MLP
    dims_dist = [input_dim, H1, H2, edge_types]      # MLP_distribution
    # MLP_factor exists in __init__ but is unused in forward -> not built.

    params = {}
    keys = jax.random.split(key, 12)
    ki = 0

    def make(dims, wnames, bnames):
        nonlocal ki
        for (din, dout), wn, bn in zip(zip(dims[:-1], dims[1:]), wnames, bnames):
            scale = 1.0 / np.sqrt(din)
            params[wn] = jax.random.uniform(keys[ki], (din, dout), jnp.float32, -scale, scale)
            ki += 1
            params[bn] = jax.random.uniform(keys[ki], (1, dout), jnp.float32, -scale, scale)
            ki += 1

    make(dims_init, ("w0", "w1", "w2"), ("b0", "b1", "b2"))
    make(dims_dist, ("u0", "u1", "u2"), ("c0", "c1", "c2"))
    return params


def reference_forward(x, p):
    """Pure-JAX f32 reference (no folding, no padding, no packing)."""
    h = jnp.maximum(x @ p["w0"] + p["b0"], 0.0)
    h = jnp.maximum(h @ p["w1"] + p["b1"], 0.0)
    h = h @ p["w2"] + p["b2"]
    d = jnp.maximum(h @ p["u0"] + p["c0"], 0.0)
    d = jnp.maximum(d @ p["u1"] + p["c1"], 0.0)
    d = jnp.abs(d @ p["u2"] + p["c2"])
    return d, d


if __name__ == "__main__":
    # Small shapes consistent with the module: batch=16, input_dim=32,
    # hidden_size=(128, 64), edge_types=10.
    B, D = 16, 32
    HIDDEN = (128, 64)
    EDGE_TYPES = 10

    key = jax.random.PRNGKey(0)
    kx, kp, kx2 = jax.random.split(key, 3)
    params = init_params(kp, D, HIDDEN, EDGE_TYPES)
    prepped = prepare_params(params)

    # --- small batch: single grid step path ---
    x = jax.random.normal(kx, (B, D), jnp.float32)
    dist, dist2 = mlp_dict_forward(x, prepped)
    dist = jax.block_until_ready(dist)
    ref, _ = reference_forward(x, params)
    np.testing.assert_allclose(np.asarray(dist), np.asarray(ref), rtol=5e-2, atol=5e-2)
    assert dist.shape == (B, EDGE_TYPES)
    assert np.array_equal(np.asarray(dist), np.asarray(dist2))
    assert np.all(np.asarray(dist) >= 0.0)

    # --- larger, non-divisible batch: 2 parallel grid steps + ragged tail ---
    B2 = 3000
    x2 = jax.random.normal(kx2, (B2, D), jnp.float32)
    dist_l, _ = mlp_dict_forward(x2, prepped)
    dist_l = jax.block_until_ready(dist_l)
    ref_l, _ = reference_forward(x2, params)
    np.testing.assert_allclose(np.asarray(dist_l), np.asarray(ref_l), rtol=5e-2, atol=5e-2)
    assert dist_l.shape == (B2, EDGE_TYPES)

    print("KERNEL_OK")
</pallas_src>

<mosaic_0001>
module attributes {stable_mosaic.version = 11 : i64} {
  func.func @kernel(%arg0: i32, %arg1: memref<16x32xf32, #tpu.memory_space<vmem>>, %arg2: memref<416x128xbf16, #tpu.memory_space<vmem>>, %arg3: memref<5x128xf32, #tpu.memory_space<vmem>>, %arg4: memref<16x128xbf16, #tpu.memory_space<vmem>>) attributes {dimension_semantics = [#tpu.dimension_semantics<parallel>], iteration_bounds = array<i64: 1>, scalar_prefetch = 0 : i64, scratch_operands = 0 : i64, tpu.core_type = #tpu.core_type<tc>, window_params = [{transform_indices = @transform_0, window_bounds = array<i64: 16, 32>}, {pipeline_mode = #tpu.pipeline_mode<synchronous>, transform_indices = @transform_1, window_bounds = array<i64: 416, 128>}, {pipeline_mode = #tpu.pipeline_mode<synchronous>, transform_indices = @transform_2, window_bounds = array<i64: 5, 128>}, {transform_indices = @transform_3, window_bounds = array<i64: 16, 128>}]} {
    %c0 = arith.constant 0 : index
    %c0_0 = arith.constant 0 : index
    %0 = vector.load %arg1[%c0, %c0_0] : memref<16x32xf32, #tpu.memory_space<vmem>>, vector<16x32xf32>
    %1 = arith.truncf %0 : vector<16x32xf32> to vector<16x32xbf16>
    %c0_1 = arith.constant 0 : index
    %c0_2 = arith.constant 0 : index
    %2 = vector.load %arg2[%c0_1, %c0_2] : memref<416x128xbf16, #tpu.memory_space<vmem>>, vector<32x128xbf16>
    %c0_3 = arith.constant 0 : index
    %c0_4 = arith.constant 0 : index
    %3 = vector.load %arg3[%c0_3, %c0_4] : memref<5x128xf32, #tpu.memory_space<vmem>>, vector<1x128xf32>
    %cst = arith.constant dense<0.000000e+00> : vector<16x128xf32>
    %4 = tpu.matmul %1, %2, %cst {dimension_numbers = #tpu.dot_dimension_numbers<[1], [0], [0], [1], [0, 0, 1, 1], [], []>} : vector<16x32xbf16>, vector<32x128xbf16>, vector<16x128xf32> -> vector<16x128xf32>
    %5 = vector.broadcast %3 : vector<1x128xf32> to vector<16x128xf32>
    %6 = arith.addf %4, %5 : vector<16x128xf32>
    %7 = arith.truncf %6 : vector<16x128xf32> to vector<16x128xbf16>
    %cst_5 = arith.constant 0.000000e+00 : bf16
    %8 = vector.broadcast %cst_5 : bf16 to vector<16x128xbf16>
    %9 = arith.maximumf %7, %8 : vector<16x128xbf16>
    %c32 = arith.constant 32 : index
    %c0_6 = arith.constant 0 : index
    %10 = vector.load %arg2[%c32, %c0_6] : memref<416x128xbf16, #tpu.memory_space<vmem>>, vector<128x64xbf16>
    %c1 = arith.constant 1 : index
    %c0_7 = arith.constant 0 : index
    %11 = vector.load %arg3[%c1, %c0_7] : memref<5x128xf32, #tpu.memory_space<vmem>>, vector<1x64xf32>
    %cst_8 = arith.constant dense<0.000000e+00> : vector<16x64xf32>
    %12 = tpu.matmul %9, %10, %cst_8 {dimension_numbers = #tpu.dot_dimension_numbers<[1], [0], [0], [1], [0, 0, 1, 1], [], []>} : vector<16x128xbf16>, vector<128x64xbf16>, vector<16x64xf32> -> vector<16x64xf32>
    %13 = vector.broadcast %11 : vector<1x64xf32> to vector<16x64xf32>
    %14 = arith.addf %12, %13 : vector<16x64xf32>
    %15 = arith.truncf %14 : vector<16x64xf32> to vector<16x64xbf16>
    %cst_9 = arith.constant 0.000000e+00 : bf16
    %16 = vector.broadcast %cst_9 : bf16 to vector<16x64xbf16>
    %17 = arith.maximumf %15, %16 : vector<16x64xbf16>
    %c160 = arith.constant 160 : index
    %c0_10 = arith.constant 0 : index
    %18 = vector.load %arg2[%c160, %c0_10] : memref<416x128xbf16, #tpu.memory_space<vmem>>, vector<64x128xbf16>
    %c2 = arith.constant 2 : index
    %c0_11 = arith.constant 0 : index
    %19 = vector.load %arg3[%c2, %c0_11] : memref<5x128xf32, #tpu.memory_space<vmem>>, vector<1x128xf32>
    %cst_12 = arith.constant dense<0.000000e+00> : vector<16x128xf32>
    %20 = tpu.matmul %17, %18, %cst_12 {dimension_numbers = #tpu.dot_dimension_numbers<[1], [0], [0], [1], [0, 0, 1, 1], [], []>} : vector<16x64xbf16>, vector<64x128xbf16>, vector<16x128xf32> -> vector<16x128xf32>
    %21 = vector.broadcast %19 : vector<1x128xf32> to vector<16x128xf32>
    %22 = arith.addf %20, %21 : vector<16x128xf32>
    %23 = arith.truncf %22 : vector<16x128xf32> to vector<16x128xbf16>
    %cst_13 = arith.constant 0.000000e+00 : bf16
    %24 = vector.broadcast %cst_13 : bf16 to vector<16x128xbf16>
    %25 = arith.maximumf %23, %24 : vector<16x128xbf16>
    %c224 = arith.constant 224 : index
    %c0_14 = arith.constant 0 : index
    %26 = vector.load %arg2[%c224, %c0_14] : memref<416x128xbf16, #tpu.memory_space<vmem>>, vector<128x64xbf16>
    %c3 = arith.constant 3 : index
    %c0_15 = arith.constant 0 : index
    %27 = vector.load %arg3[%c3, %c0_15] : memref<5x128xf32, #tpu.memory_space<vmem>>, vector<1x64xf32>
    %cst_16 = arith.constant dense<0.000000e+00> : vector<16x64xf32>
    %28 = tpu.matmul %25, %26, %cst_16 {dimension_numbers = #tpu.dot_dimension_numbers<[1], [0], [0], [1], [0, 0, 1, 1], [], []>} : vector<16x128xbf16>, vector<128x64xbf16>, vector<16x64xf32> -> vector<16x64xf32>
    %29 = vector.broadcast %27 : vector<1x64xf32> to vector<16x64xf32>
    %30 = arith.addf %28, %29 : vector<16x64xf32>
    %31 = arith.truncf %30 : vector<16x64xf32> to vector<16x64xbf16>
    %cst_17 = arith.constant 0.000000e+00 : bf16
    %32 = vector.broadcast %cst_17 : bf16 to vector<16x64xbf16>
    %33 = arith.maximumf %31, %32 : vector<16x64xbf16>
    %c352 = arith.constant 352 : index
    %c0_18 = arith.constant 0 : index
    %34 = vector.load %arg2[%c352, %c0_18] : memref<416x128xbf16, #tpu.memory_space<vmem>>, vector<64x128xbf16>
    %c4 = arith.constant 4 : index
    %c0_19 = arith.constant 0 : index
    %35 = vector.load %arg3[%c4, %c0_19] : memref<5x128xf32, #tpu.memory_space<vmem>>, vector<1x128xf32>
    %cst_20 = arith.constant dense<0.000000e+00> : vector<16x128xf32>
    %36 = tpu.matmul %33, %34, %cst_20 {dimension_numbers = #tpu.dot_dimension_numbers<[1], [0], [0], [1], [0, 0, 1, 1], [], []>} : vector<16x64xbf16>, vector<64x128xbf16>, vector<16x128xf32> -> vector<16x128xf32>
    %37 = vector.broadcast %35 : vector<1x128xf32> to vector<16x128xf32>
    %38 = arith.addf %36, %37 : vector<16x128xf32>
    %39 = math.absf %38 : vector<16x128xf32>
    %40 = arith.truncf %39 : vector<16x128xf32> to vector<16x128xbf16>
    %c0_21 = arith.constant 0 : index
    %c0_22 = arith.constant 0 : index
    %41 = vector.load %arg4[%c0_21, %c0_22] : memref<16x128xbf16, #tpu.memory_space<vmem>>, vector<16x128xbf16>
    tpu.vector_store %arg4[%c0_21, %c0_22], %40 {strides = array<i32>} : memref<16x128xbf16, #tpu.memory_space<vmem>>, vector<16x128xbf16>,
    return
  }
  func.func @transform_0(%arg0: i32) -> (i32, i32) {
    %c0_i32 = arith.constant 0 : i32
    %c0_i32_0 = arith.constant 0 : i32
    return %arg0, %c0_i32 : i32, i32
  }
  func.func @transform_1(%arg0: i32) -> (i32, i32) {
    %c0_i32 = arith.constant 0 : i32
    %c0_i32_0 = arith.constant 0 : i32
    %c0_i32_1 = arith.constant 0 : i32
    return %c0_i32, %c0_i32_0 : i32, i32
  }
  func.func @transform_2(%arg0: i32) -> (i32, i32) {
    %c0_i32 = arith.constant 0 : i32
    %c0_i32_0 = arith.constant 0 : i32
    %c0_i32_1 = arith.constant 0 : i32
    return %c0_i32, %c0_i32_0 : i32, i32
  }
  func.func @transform_3(%arg0: i32) -> (i32, i32) {
    %c0_i32 = arith.constant 0 : i32
    %c0_i32_0 = arith.constant 0 : i32
    return %arg0, %c0_i32 : i32, i32
  }
}

</mosaic_0001>

<bundles_post_ra>
// kernel: tpu_custom_call.1
= control target key start
LH: loop header
LB: loop body
LE: loop exit
PB: predicated region body
PF: predicated region fallthrough
CT: control target
= control target key end

     0   :  { %8 = vsyncpa [#allocation3], 0  ;;  %s949_s0 = inlined_call_operand.hbm [shape: f32[16,32], index: 0, kind: input, shape index: {}]   ;;  %s950_s1 = inlined_call_operand.hbm [shape: bf16[416,128], index: 1, kind: input, shape index: {}]   ;;  %s951_s2 = inlined_call_operand.hbm [shape: f32[5,128], index: 2, kind: input, shape index: {}]   ;;  %s952_s3 = inlined_call_operand.hbm [shape: bf16[16,128], index: 3, kind: output, shape index: {}]  }
   0x1   :  { %9 = vsyncpa [#allocation6], 0 }
   0x2   :  { %10 = vsyncpa [#allocation4], 0  ;;  %s822_s12 = smov [#allocation5]   ;;  %s728_s16 = scalar_lea.hbm %s950_s1, 3328 }
   0x3   :  { %s28_s13 = sshll.u32 %s822_s12, 4  ;;  %p729_p0 = scmp.ne.s32.totalorder %s950_s1, %s728_s16  ;;  %s29_s13 = int_to_ptr.vmem [resolvable:$true] %s28_s13 }
   0x4   :  { %p732_p1 = scmp.lt.u32.totalorder %s728_s16, %s950_s1 }
   0x6   :  { %p734_p2 = pnand %p732_p1, %p729_p0 }
   0x8   :  { %737 = shalt.err (!%p734_p2)
}
   0x9   :  { %s738_s21 = scalar_lea.vmem %s29_s13, 3328  ;;  %p743_p4 = scmp.lt.s32.totalorder %s29_s13, %s29_s13 }
   0xa   :  { %p739_p3 = scmp.ne.s32.totalorder %s29_s13, %s738_s21  ;;  %p744_p5 = scmp.lt.s32.totalorder %s738_s21, %s738_s21 }
   0xc   :  { %p745_p6 = por %p744_p5, %p743_p4 }
   0xe   :  { %p746_p7 = pnand %p745_p6, %p739_p3 }
  0x10   :  { %749 = shalt.err (!%p746_p7)
}
  0x11   :  { %s823_s22 = smov 64   ;;  %s824_s23 = smov 4  }
  0x12   :  { %34 = dma.hbm_to_vmem [thread:$0]  %s950_s1, 3328, %s29_s13, [#allocation6], %s823_s22, %s823_s22, %s824_s23  }
  0x13   :  { %s825_s26 = smov [#allocation2]   ;;  %s750_s30 = scalar_lea.hbm %s949_s0, 256 }
  0x14   :  { %s16_s27 = sshll.u32 %s825_s26, 4  ;;  %p751_p8 = scmp.ne.s32.totalorder %s949_s0, %s750_s30  ;;  %s17_s27 = int_to_ptr.vmem [resolvable:$true] %s16_s27 }
  0x15   :  { %p754_p9 = scmp.lt.u32.totalorder %s750_s30, %s949_s0 }
  0x17   :  { %p756_p10 = pnand %p754_p9, %p751_p8 }
  0x19   :  { %759 = shalt.err (!%p756_p10)
}
  0x1a   :  { %s760_s8 = scalar_lea.vmem %s17_s27, 256  ;;  %p765_p12 = scmp.lt.s32.totalorder %s17_s27, %s17_s27 }
  0x1b   :  { %p761_p11 = scmp.ne.s32.totalorder %s17_s27, %s760_s8  ;;  %p766_p13 = scmp.lt.s32.totalorder %s760_s8, %s760_s8 }
  0x1d   :  { %p767_p0 = por %p766_p13, %p765_p12 }
  0x1f   :  { %p768_p1 = pnand %p767_p0, %p761_p11 }
  0x21   :  { %771 = shalt.err (!%p768_p1)
}
  0x22   :  { %s826_s1 = smov 128   ;;  %s827_s9 = smov 8  }
  0x23   :  { %22 = dma.hbm_to_vmem [thread:$0]  %s949_s0, 256, %s17_s27, [#allocation3], %s826_s1, %s826_s1, %s827_s9  }
  0x24   :  { %s828_s12 = smov [#allocation7]   ;;  %s772_s16 = scalar_lea.hbm %s951_s2, 128 }
  0x25   :  { %s41_s13 = sshll.u32 %s828_s12, 4  ;;  %p773_p2 = scmp.ne.s32.totalorder %s951_s2, %s772_s16  ;;  %s42_s13 = int_to_ptr.vmem [resolvable:$true] %s41_s13 }
  0x26   :  { %p776_p3 = scmp.lt.u32.totalorder %s772_s16, %s951_s2 }
  0x28   :  { %p778_p4 = pnand %p776_p3, %p773_p2 }
  0x2a   :  { %781 = shalt.err (!%p778_p4)
}
  0x2b   :  { %s782_s21 = scalar_lea.vmem %s42_s13, 128  ;;  %p787_p6 = scmp.lt.s32.totalorder %s42_s13, %s42_s13 }
  0x2c   :  { %p783_p5 = scmp.ne.s32.totalorder %s42_s13, %s782_s21  ;;  %p788_p7 = scmp.lt.s32.totalorder %s782_s21, %s782_s21 }
  0x2e   :  { %p789_p8 = por %p788_p7, %p787_p6 }
  0x30   :  { %p790_p9 = pnand %p789_p8, %p783_p5 }
  0x32   :  { %793 = shalt.err (!%p790_p9)
}
  0x33   :  { %44 = dma.hbm_to_vmem [thread:$0]  %s951_s2, 128, %s42_s13, [#allocation6]  }
  0x34   :  { %816 = dma.done.wait [#allocation3], 256  }
  0x35   :  { %817 = vsyncadd [#allocation3], 4294967040 }
  0x36   :  { %818 = dma.done.wait [#allocation6], 3456  }
  0x37   :  { %819 = vsyncadd [#allocation6], 4294963840  ;;  %v829_v0 = vmov 0.0   ;;  %vm830_vm0 = vmmov 0   ;;  %v702_v1 = vld [vmem:[#allocation5] sm:$0xff]   ;;  %v703_v2 = vld [vmem:[#allocation5 + $0x8] sm:$0xff]  }
  0x38   :  { %619 = vmatprep.subr.bf16.mxu0 %v829_v0  ;;  %623 = vmatprep.mubr.msk.bf16.mxu0 %vm830_vm0, %v829_v0  ;;  %v55_v3 = vld [vmem:[#allocation2] sm:$0xff]  ;;  %v56_v4 = vld [vmem:[#allocation2 + $0x8] sm:$0xff]  ;;  %vm79_vm1 = vcmask 261120   ;;  %v706_v8 = vld [vmem:[#allocation5 + $0x20] sm:$0xff]   ;;  %v831_v24 = vmov 0   ;;  %vm275_vm2 = vcmask 523264  }
  0x39   :  { %627 = vmatprep.subr.bf16.mxu1 %v829_v0  ;;  %643 = vmatprep.mubr.msk.bf16.mxu1 %vm830_vm0, %v829_v0  ;;  %v704_v5 = vld [vmem:[#allocation5 + $0x10] sm:$0xff]   ;;  %v57_v6 = vpack.c.bf16 %v56_v4, %v55_v3  ;;  %v705_v7 = vld [vmem:[#allocation5 + $0x18] sm:$0xff]   ;;  %v707_v9 = vld [vmem:[#allocation5 + $0x28] sm:$0xff]   ;;  %s832_s2 = smov [#allocation8]  }
  0x3a   :  { %620 = vmatpush3.bf16.msra.mxu0 %v702_v1  ;;  %628 = vmatpush3.bf16.msra.mxu1 %v704_v5  ;;  %v708_v10 = vld [vmem:[#allocation5 + $0x30] sm:$0xff]   ;;  %v709_v11 = vld [vmem:[#allocation5 + $0x38] sm:$0xff]   ;;  %v710_v12 = vld [vmem:[#allocation5 + $0x40] sm:$0xff]   ;;  %s532_s25 = sshll.u32 %s832_s2, 4  ;;  %s533_s25 = int_to_ptr.vmem [resolvable:$true] %s532_s25 }
  0x3b   :  { %621 = vmatprep.subr.bf16.mxu0 %v829_v0  ;;  %629 = vmatprep.subr.bf16.mxu1 %v829_v0  ;;  %v711_v13 = vld [vmem:[#allocation5 + $0x48] sm:$0xff]   ;;  %v712_v14 = vld [vmem:[#allocation5 + $0x50] sm:$0xff]   ;;  %v713_v15 = vld [vmem:[#allocation5 + $0x58] sm:$0xff]   ;;  %s794_s26 = scalar_lea.vmem %s533_s25, 128  ;;  %p799_p11 = scmp.lt.s32.totalorder %s533_s25, %s533_s25 }
  0x3c   :  { %v545_v16 = vld [vmem:[#allocation7] ss:$0 sm:$0xff]  ;;  %v714_v26 = vld [vmem:[#allocation5 + $0x60] sm:$0xff]   ;;  %v715_v27 = vld [vmem:[#allocation5 + $0x68] sm:$0xff]   ;;  %p795_p10 = scmp.ne.s32.totalorder %s533_s25, %s794_s26  ;;  %p800_p12 = scmp.lt.s32.totalorder %s794_s26, %s794_s26 }
  0x3d   :  { %v549_v28 = vld [vmem:[#allocation7 + $0x1] ss:$0 sm:$0xff]  ;;  %v717_v38 = vld [vmem:[#allocation5 + $0x78] sm:$0xff]   ;;  %v718_v39 = vld [vmem:[#allocation5 + $0x80] sm:$0xff]  }
  0x3e   :  { %622 = vmatpush3.bf16.msra.mxu0 %v703_v2  ;;  %630 = vmatpush3.bf16.msra.mxu1 %v705_v7  ;;  %v716_v36 = vld [vmem:[#allocation5 + $0x70] sm:$0xff]   ;;  %v719_v40 = vld [vmem:[#allocation5 + $0x88] sm:$0xff]   ;;  %v721_v42 = vld [vmem:[#allocation5 + $0x98] sm:$0xff]   ;;  %p801_p13 = por %p800_p12, %p799_p11 }
  0x3f   :  { %647 = vmatprep.subr.bf16.mxu0 %v829_v0  ;;  %631 = vmatprep.subr.bf16.mxu1 %v829_v0  ;;  %v720_v41 = vld [vmem:[#allocation5 + $0x90] sm:$0xff]   ;;  %v722_v43 = vld [vmem:[#allocation5 + $0xa0] sm:$0xff]   ;;  %v723_v44 = vld [vmem:[#allocation5 + $0xa8] sm:$0xff]  }
  0x40   :  { %v724_v45 = vld [vmem:[#allocation5 + $0xb0] sm:$0xff]   ;;  %v725_v46 = vld [vmem:[#allocation5 + $0xb8] sm:$0xff]   ;;  %v726_v56 = vld [vmem:[#allocation5 + $0xc0] sm:$0xff]   ;;  %p802_p0 = pnand %p801_p13, %p795_p10 }
  0x41   :  { %624 = vmatmul.mubr.msk.bf16.vlgmr.msra.gmra.mrb[0].mxu0 %vm79_vm1, %v57_v6  ;;  %v558_v47 = vld [vmem:[#allocation7 + $0x2] ss:$0 sm:$0xff]  ;;  %v727_v57 = vld [vmem:[#allocation5 + $0xc8] sm:$0xff]   ;;  %v564_v58 = vld [vmem:[#allocation7 + $0x3] ss:$0 sm:$0xff] }
  0x42   :  { %655 = vmatprep.mubr.msk.bf16.mxu0 %vm830_vm0, %v829_v0  ;;  %632 = vmatpush3.bf16.msra.mxu1 %v706_v8  ;;  %v573_v4 = vld [vmem:[#allocation7 + $0x4] ss:$0 sm:$0xff] }
  0x43   :  { %633 = vmatprep.subr.bf16.mxu1 %v829_v0  ;;  %648 = vmatpush3.bf16.msra.mxu0 %v712_v14 }
  0x44   :  { %649 = vmatprep.subr.bf16.mxu0 %v829_v0 }
  0x46   :  { %634 = vmatpush3.bf16.msra.mxu1 %v707_v9 }
  0x47   :  { %635 = vmatprep.subr.bf16.mxu1 %v829_v0  ;;  %650 = vmatpush3.bf16.msra.mxu0 %v713_v15 }
  0x48   :  { %651 = vmatprep.subr.bf16.mxu0 %v829_v0 }
  0x4a   :  { %636 = vmatpush3.bf16.msra.mxu1 %v708_v10 }
  0x4b   :  { %637 = vmatprep.subr.bf16.mxu1 %v829_v0  ;;  %652 = vmatpush3.bf16.msra.mxu0 %v714_v26 }
  0x4c   :  { %653 = vmatprep.subr.bf16.mxu0 %v829_v0 }
  0x4e   :  { %638 = vmatpush3.bf16.msra.mxu1 %v709_v11 }
  0x4f   :  { %639 = vmatprep.subr.bf16.mxu1 %v829_v0  ;;  %654 = vmatpush3.bf16.msra.mxu0 %v715_v27 }
  0x50   :  { %659 = vmatprep.subr.bf16.mxu0 %v829_v0 }
  0x52   :  { %640 = vmatpush3.bf16.msra.mxu1 %v710_v12 }
  0x53   :  { %641 = vmatprep.subr.bf16.mxu1 %v829_v0 }
  0x56   :  { %642 = vmatpush3.bf16.msra.mxu1 %v711_v13 }
  0x57   :  { %679 = vmatprep.subr.bf16.mxu1 %v829_v0 }
 0x114   :  { %v117_v17 = vpop.f32.mrb[0].mxu0 }
 0x115   :  { %v625_v18 = vpop.f32.mrb[1].mxu0  ;;  %v118_v20 = vadd.f32 %v545_v16, %v117_v17 }
 0x116   :  { %v120_v19 = vpop.f32.mrb[2].mxu0 }
 0x117   :  { %v121_v21 = vadd.f32 %v545_v16, %v120_v19  ;;  %v626_v22 = vpop.f32.mrb[3].mxu0 }
 0x119   :  { %v124_v23 = vpack.c.bf16 %v121_v21, %v118_v20 }
 0x11b   :  { %v125_v25 = vmax.bf16 %v831_v24, %v124_v23 }
 0x11d   :  { %644 = vmatmul.mubr.bf16.vlgmr.msra.gmra.mrb[0].mxu1 %v125_v25 }
 0x11e   :  { %687 = vmatprep.mubr.msk.bf16.mxu1 %vm830_vm0, %v829_v0  ;;  %680 = vmatpush3.bf16.msra.mxu1 %v724_v45 }
 0x11f   :  { %681 = vmatprep.subr.bf16.mxu1 %v829_v0 }
 0x122   :  { %682 = vmatpush3.bf16.msra.mxu1 %v725_v46 }
 0x123   :  { %683 = vmatprep.subr.bf16.mxu1 %v829_v0 }
 0x126   :  { %684 = vmatpush3.bf16.msra.mxu1 %v726_v56 }
 0x127   :  { %685 = vmatprep.subr.bf16.mxu1 %v829_v0 }
 0x12a   :  { %686 = vmatpush3.bf16.msra.mxu1 %v727_v57 }
 0x1f0   :  { %v229_v29 = vpop.f32.mrb[0].mxu1 }
 0x1f1   :  { %v645_v30 = vpop.f32.mrb[1].mxu1  ;;  %v230_v32 = vadd.f32 %v549_v28, %v229_v29 }
 0x1f2   :  { %v232_v31 = vpop.f32.mrb[2].mxu1 }
 0x1f3   :  { %v233_v33 = vadd.f32 %v549_v28, %v232_v31  ;;  %v646_v34 = vpop.f32.mrb[3].mxu1 }
 0x1f5   :  { %v236_v35 = vpack.c.bf16 %v233_v33, %v230_v32 }
 0x1f7   :  { %v237_v37 = vmax.bf16 %v831_v24, %v236_v35 }
 0x1f9   :  { %656 = vmatmul.mubr.msk.bf16.vlgmr.msra.gmra.mrb[4].mxu0 %vm275_vm2, %v237_v37 }
 0x1fa   :  { %660 = vmatpush3.bf16.msra.mxu0 %v716_v36  ;;  %675 = vmatprep.mubr.msk.bf16.mxu0 %vm830_vm0, %v829_v0 }
 0x1fb   :  { %661 = vmatprep.subr.bf16.mxu0 %v829_v0 }
 0x1fe   :  { %662 = vmatpush3.bf16.msra.mxu0 %v717_v38 }
 0x1ff   :  { %663 = vmatprep.subr.bf16.mxu0 %v829_v0 }
 0x202   :  { %664 = vmatpush3.bf16.msra.mxu0 %v718_v39 }
 0x203   :  { %665 = vmatprep.subr.bf16.mxu0 %v829_v0 }
 0x206   :  { %666 = vmatpush3.bf16.msra.mxu0 %v719_v40 }
 0x207   :  { %667 = vmatprep.subr.bf16.mxu0 %v829_v0 }
 0x20a   :  { %668 = vmatpush3.bf16.msra.mxu0 %v720_v41 }
 0x20b   :  { %669 = vmatprep.subr.bf16.mxu0 %v829_v0 }
 0x20e   :  { %670 = vmatpush3.bf16.msra.mxu0 %v721_v42 }
 0x20f   :  { %671 = vmatprep.subr.bf16.mxu0 %v829_v0 }
 0x212   :  { %672 = vmatpush3.bf16.msra.mxu0 %v722_v43 }
 0x213   :  { %673 = vmatprep.subr.bf16.mxu0 %v829_v0 }
 0x216   :  { %674 = vmatpush3.bf16.msra.mxu0 %v723_v44 }
 0x2cc   :  { %v313_v48 = vpop.f32.mrb[4].mxu0 }
 0x2cd   :  { %v657_v49 = vpop.f32.mrb[5].mxu0  ;;  %v314_v51 = vadd.f32 %v558_v47, %v313_v48 }
 0x2ce   :  { %v316_v50 = vpop.f32.mrb[6].mxu0 }
 0x2cf   :  { %v317_v52 = vadd.f32 %v558_v47, %v316_v50  ;;  %v658_v53 = vpop.f32.mrb[7].mxu0 }
 0x2d1   :  { %v320_v54 = vpack.c.bf16 %v317_v52, %v314_v51 }
 0x2d3   :  { %v321_v55 = vmax.bf16 %v831_v24, %v320_v54 }
 0x2d5   :  { %676 = vmatmul.mubr.bf16.vlgmr.msra.gmra.mrb[8].mxu0 %v321_v55 }
 0x3a8   :  { %v425_v59 = vpop.f32.mrb[8].mxu0 }
 0x3a9   :  { %v677_v60 = vpop.f32.mrb[9].mxu0  ;;  %v426_v62 = vadd.f32 %v564_v58, %v425_v59 }
 0x3aa   :  { %v428_v61 = vpop.f32.mrb[10].mxu0 }
 0x3ab   :  { %v429_v63 = vadd.f32 %v564_v58, %v428_v61  ;;  %v678_v1 = vpop.f32.mrb[11].mxu0 }
 0x3ad   :  { %v432_v2 = vpack.c.bf16 %v429_v63, %v426_v62 }
 0x3af   :  { %v433_v3 = vmax.bf16 %v831_v24, %v432_v2 }
 0x3b1   :  { %688 = vmatmul.mubr.msk.bf16.vlgmr.msra.gmra.mrb[4].mxu1 %vm275_vm2, %v433_v3 }
 0x484   :  { %v508_v5 = vpop.f32.mrb[4].mxu1 }
 0x485   :  { %v509_v6 = vadd.f32 %v573_v4, %v508_v5  ;;  %v689_v7 = vpop.f32.mrb[5].mxu1 }
 0x486   :  { %v511_v8 = vpop.f32.mrb[6].mxu1 }
 0x487   :  { %v512_v0 = vadd.f32 %v573_v4, %v511_v8  ;;  %v690_v9 = vpop.f32.mrb[7].mxu1  ;;  %v515_v10 = vand.u32 2147483647, %v509_v6 }
 0x489   :  { %v516_v11 = vand.u32 2147483647, %v512_v0 }
 0x48b   :  { %v586_v12 = vpack.c.bf16 %v516_v11, %v515_v10 }
 0x48d   :  { %587 = vst [vmem:[#allocation8] sm:$0xff] %v586_v12  }
 0x48e   :  { %805 = shalt.err (!%p802_p0)
}
 0x48f   :  { %s806_s29 = scalar_lea.hbm %s952_s3, 128 }
 0x490   :  { %p807_p1 = scmp.ne.s32.totalorder %s952_s3, %s806_s29  ;;  %p810_p2 = scmp.lt.u32.totalorder %s806_s29, %s952_s3 }
 0x492   :  { %p812_p3 = pnand %p810_p2, %p807_p1 }
 0x494   :  { %815 = shalt.err (!%p812_p3)
}
 0x495   :  { %538 = dma.vmem_to_hbm [thread:$0]  %s533_s25, 128, %s952_s3, [#allocation4], %s823_s22, %s823_s22, %s824_s23  }
 0x496   :  { %820 = dma.done.wait [#allocation4], 128  }
 0x497   :  { %821 = vsyncadd [#allocation4], 4294967168 }
 0x498   :  { %542 = vsyncpa [#allocation3], 1 }
 0x499   :  { %543 = vsyncpa [#allocation6], 1 }
 0x49a   :  { %544 = vsyncpa [#allocation4], 1 }

</bundles_post_ra>
